<compile_context>
chip_gen: v7x
topology: tpu7x:2x2x1
jax: 0.10.0
libtpu: 0.0.40
codegen_flags: <defaults>
</compile_context>

<pallas_src>
import jax
import jax.numpy as jnp
from jax.experimental import pallas as pl
from jax.experimental.pallas import tpu as pltpu

EPS = 1e-5


def residual_block_kernel(x_ref,                 # (N, H, W*Cin)      f32
                          w1_ref,                # (3*W*Cin,  W*Cout) bf16 banded conv1
                          w2_ref,                # (3*W*Cout, W*Cout) bf16 banded conv2
                          w3_ref,                # (W*Cin,   W*Cout)  bf16 block-diag 1x1 conv
                          wsse_ref,              # (W*Cout,  W*Cout)  bf16 sSE gate (chan-broadcast baked in)
                          wsq_ref,               # (W*Cout, Cout//2)  bf16 cSE squeeze (/W pool baked in)
                          wex_ref,               # (Cout//2, W*Cout)  bf16 cSE excite (W-tile baked in)
                          avg_ref,               # (W*Cout,  W*Cout)  f32  per-channel group-average
                          g1_ref, be1_ref, g2_ref, be2_ref, g3_ref, be3_ref,  # (1, W*Cout) f32
                          out_ref):              # (N, H, W*Cout)     f32
    N, H, WCin = x_ref.shape
    WCout = out_ref.shape[-1]
    NH = N * H

    def shifted_taps(a):
        # a: (N, H, L) f32 -> (N*H, 3L) with column blocks [row h-1 | row h | row h+1]
        # (zero rows at the image top/bottom).  Matches the banded weight layout,
        # so the whole 3x3 conv is a single matmul.
        L = a.shape[-1]
        zero = jnp.zeros((N, 1, L), a.dtype)
        up = jnp.concatenate([zero, a[:, :-1, :]], axis=1)     # x[n, h-1, :]
        dn = jnp.concatenate([a[:, 1:, :], zero], axis=1)      # x[n, h+1, :]
        return jnp.concatenate([up, a, dn], axis=2).reshape(NH, 3 * L)

    def batchnorm(y, g_ref, be_ref):
        # Training-mode BN in one pass: E[x], E[x^2] over rows, then one tiny
        # f32 matmul with avg_ref folds the W lane-groups into per-channel stats
        # that come back already broadcast across all W*Cout lanes.
        s1 = jnp.mean(y, axis=0, keepdims=True)
        s2 = jnp.mean(y * y, axis=0, keepdims=True)
        stats = jnp.dot(jnp.concatenate([s1, s2], axis=0), avg_ref[...],
                        preferred_element_type=jnp.float32)     # (2, W*Cout)
        mean = stats[0:1]
        var = stats[1:2] - mean * mean                          # biased variance
        scale = g_ref[...] * jax.lax.rsqrt(var + EPS)
        shift = be_ref[...] - mean * scale
        return y * scale + shift                                # fused affine

    x = x_ref[...]                                              # (N, H, WCin) f32

    # ---- conv1 (3x3, one matmul) + bn1 + relu ----
    y1 = jnp.dot(shifted_taps(x).astype(jnp.bfloat16), w1_ref[...],
                 preferred_element_type=jnp.float32)            # (NH, WCout) f32
    x1 = jnp.maximum(batchnorm(y1, g1_ref, be1_ref), 0.0)

    # ---- conv2 (3x3, one matmul) + bn2 ----
    y2 = jnp.dot(shifted_taps(x1.reshape(N, H, WCout)).astype(jnp.bfloat16),
                 w2_ref[...], preferred_element_type=jnp.float32)
    x2 = batchnorm(y2, g2_ref, be2_ref)

    # ---- conv3 (1x1, block-diagonal matmul) + bn3 ----
    y3 = jnp.dot(x.reshape(NH, WCin).astype(jnp.bfloat16), w3_ref[...],
                 preferred_element_type=jnp.float32)
    x3 = batchnorm(y3, g3_ref, be3_ref)                         # (NH, WCout) f32
    x3_b = x3.astype(jnp.bfloat16)

    # ---- sSE: per-pixel sigmoid gate; channel broadcast baked into wsse_ref ----
    q = jax.nn.sigmoid(jnp.dot(x3_b, wsse_ref[...],
                               preferred_element_type=jnp.float32))  # (NH, WCout)
    u_sse = x3 * q

    # ---- cSE: global avg pool -> squeeze -> excite -> per-channel gate ----
    x3_3d = x3.reshape(N, H, WCout)
    hmean = jnp.mean(x3_3d, axis=1)                             # (N, WCout); /W is folded into wsq_ref
    s = jnp.dot(hmean.astype(jnp.bfloat16), wsq_ref[...],
                preferred_element_type=jnp.float32)             # (N, Cout//2)
    e = jnp.dot(s.astype(jnp.bfloat16), wex_ref[...],
                preferred_element_type=jnp.float32)             # (N, WCout), tiled over w
    gate = jax.nn.sigmoid(e)
    u_cse = x3_3d * gate[:, None, :]

    # ---- residual add + relu; lane-dense (128-wide) unmasked store ----
    out = x2.reshape(N, H, WCout) + u_cse + u_sse.reshape(N, H, WCout)
    out_ref[...] = jnp.maximum(out, 0.0)


def residual_block(x_nchw, p):
    N, Cin, H, W = x_nchw.shape
    Cout = p['w1'].shape[-1]
    Csq = Cout // 2
    WCin, WCout = W * Cin, W * Cout
    f32, bf16 = jnp.float32, jnp.bfloat16

    # Activations: NCHW -> lane-dense (N, H, W*Cin).  No jnp.pad pass.
    x = jnp.transpose(x_nchw, (0, 2, 3, 1)).reshape(N, H, WCin).astype(f32)

    # --- one-time weight preprocessing (tiny tensors, plain XLA ops) ---
    def banded(w, ci):
        # w: (3, 3, ci, Cout) -> (3*W*ci, W*Cout).  Row block dy, then w_in*ci+c.
        # Band[dy, w_in*ci+c, w_out*Cout+co] = w[dy, w_in-w_out+1, c, co] (0 outside),
        # which also encodes the zero padding along W.
        wi = jnp.arange(W)[:, None]
        wo = jnp.arange(W)[None, :]
        dx = wi - wo + 1
        valid = ((dx >= 0) & (dx <= 2)).astype(w.dtype)
        b = w[:, jnp.clip(dx, 0, 2)] * valid[None, :, :, None, None]  # (3, W, W, ci, Cout)
        return b.transpose(0, 1, 3, 2, 4).reshape(3 * W * ci, W * Cout)

    eye_w = jnp.eye(W, dtype=f32)
    w1_big = banded(p['w1'].astype(f32), Cin).astype(bf16)                    # (3*WCin,  WCout)
    w2_big = banded(p['w2'].astype(f32), Cout).astype(bf16)                   # (3*WCout, WCout)
    w3_bd = jnp.kron(eye_w, p['w3'].astype(f32)).astype(bf16)                 # (WCin, WCout)
    wsse_x = jnp.kron(eye_w, jnp.tile(p['wsse'].astype(f32), (1, Cout))).astype(bf16)
    wsq_p = (jnp.tile(p['wsq'].astype(f32), (W, 1)) / W).astype(bf16)         # avg-pool /W folded in
    wex_t = jnp.tile(p['wex'].astype(f32), (1, W)).astype(bf16)
    avg = jnp.kron(jnp.ones((W, W), f32), jnp.eye(Cout, dtype=f32)) / W       # f32, (WCout, WCout)
    tile_c = lambda v: jnp.tile(v.astype(f32).reshape(1, Cout), (1, W))       # (1, WCout)
    g1, be1 = tile_c(p['g1']), tile_c(p['be1'])
    g2, be2 = tile_c(p['g2']), tile_c(p['be2'])
    g3, be3 = tile_c(p['g3']), tile_c(p['be3'])
    # NOTE: conv biases b1/b2/b3 cancel exactly under training-mode BN -> not passed.

    args = (x, w1_big, w2_big, w3_bd, wsse_x, wsq_p, wex_t, avg,
            g1, be1, g2, be2, g3, be3)

    flops = 2 * N * H * WCout * (3 * WCin + 3 * WCout + WCin + WCout)   # conv1/2/3 + sSE matmuls
    flops += 2 * N * (WCout * Csq + Csq * WCout)                        # cSE squeeze / excite
    flops += 3 * 2 * 2 * WCout * WCout                                  # BN stat-folding matmuls
    cost = pl.CostEstimate(
        flops=int(flops),
        transcendentals=int(N * H * WCout + N * WCout + 3 * WCout),
        bytes_accessed=int(sum(a.size * a.dtype.itemsize for a in args)
                           + N * H * WCout * 4))

    out = pl.pallas_call(
        residual_block_kernel,
        out_shape=jax.ShapeDtypeStruct((N, H, WCout), jnp.float32),
        in_specs=[pl.BlockSpec(memory_space=pltpu.MemorySpace.VMEM)] * len(args),
        out_specs=pl.BlockSpec(memory_space=pltpu.MemorySpace.VMEM),
        cost_estimate=cost,
    )(*args)

    return jnp.transpose(out.reshape(N, H, W, Cout), (0, 3, 1, 2))      # back to NCHW


def init_params(key, in_c, out_c):
    ks = jax.random.split(key, 16)
    u = lambda k, shape, s=0.3: (jax.random.uniform(k, shape, jnp.float32) - 0.5) * 2 * s
    return {
        'w1': u(ks[0], (3, 3, in_c, out_c)),    'b1': u(ks[1], (1, out_c)),
        'g1': 1.0 + u(ks[2], (1, out_c), 0.1),  'be1': u(ks[3], (1, out_c), 0.1),
        'w2': u(ks[4], (3, 3, out_c, out_c)),   'b2': u(ks[5], (1, out_c)),
        'g2': 1.0 + u(ks[6], (1, out_c), 0.1),  'be2': u(ks[7], (1, out_c), 0.1),
        'w3': u(ks[8], (in_c, out_c)),          'b3': u(ks[9], (1, out_c)),
        'g3': 1.0 + u(ks[10], (1, out_c), 0.1), 'be3': u(ks[11], (1, out_c), 0.1),
        'wsq': u(ks[12], (out_c, out_c // 2)),
        'wex': u(ks[13], (out_c // 2, out_c)),
        'wsse': u(ks[14], (out_c, 1)),
    }


def reference(x_nchw, p):
    """Pure-JAX f32 reference mirroring the PyTorch forward (training-mode BN,
    conv biases included — they are mathematically no-ops before training BN)."""
    x = jnp.transpose(x_nchw, (0, 2, 3, 1)).astype(jnp.float32)

    def conv3(x, w):
        return jax.lax.conv_general_dilated(
            x, w, (1, 1), [(1, 1), (1, 1)],
            dimension_numbers=('NHWC', 'HWIO', 'NHWC'))

    def bn(x, g, b):
        mean = x.mean(axis=(0, 1, 2), keepdims=True)
        var = ((x - mean) ** 2).mean(axis=(0, 1, 2), keepdims=True)
        return (x - mean) * jax.lax.rsqrt(var + EPS) * g.reshape(1, 1, 1, -1) \
            + b.reshape(1, 1, 1, -1)

    x1 = jax.nn.relu(bn(conv3(x, p['w1']) + p['b1'].reshape(1, 1, 1, -1),
                        p['g1'], p['be1']))
    x2 = bn(conv3(x1, p['w2']) + p['b2'].reshape(1, 1, 1, -1), p['g2'], p['be2'])
    x3 = bn(jnp.einsum('nhwc,cd->nhwd', x, p['w3'])
            + p['b3'].reshape(1, 1, 1, -1), p['g3'], p['be3'])
    q = jax.nn.sigmoid(jnp.einsum('nhwc,co->nhwo', x3, p['wsse']))
    u_sse = x3 * q
    z = x3.mean(axis=(1, 2))
    z = jax.nn.sigmoid((z @ p['wsq']) @ p['wex'])
    u_cse = x3 * z[:, None, None, :]
    out = jax.nn.relu(x2 + u_cse + u_sse)
    return jnp.transpose(out, (0, 3, 1, 2))


if __name__ == "__main__":
    key = jax.random.PRNGKey(0)
    k_x, k_p = jax.random.split(key)

    N, in_c, out_c, H, W = 2, 4, 8, 16, 16
    x = jax.random.normal(k_x, (N, in_c, H, W), jnp.float32)   # NCHW like PyTorch
    params = init_params(k_p, in_c, out_c)

    rb = jax.jit(residual_block)
    out = jax.block_until_ready(rb(x, params))
    ref = jax.block_until_ready(reference(x, params))
    assert out.shape == (N, out_c, H, W), out.shape

    # bf16 MXU operands (per perf feedback) vs. the pure-f32 reference give
    # elementwise diffs up to ~2e-2 after two conv+BN stages; tolerances are set
    # accordingly, plus a tight global relative-L2 check.
    rel_l2 = jnp.linalg.norm(out - ref) / jnp.linalg.norm(ref)
    if not (jnp.allclose(out, ref, atol=5e-2, rtol=5e-2) and rel_l2 < 2e-2):
        raise AssertionError("Pallas kernel does not match JAX reference")

    print("KERNEL_OK")
</pallas_src>

<mosaic_0001>
module attributes {stable_mosaic.version = 11 : i64} {
  func.func @residual_block_kernel(%arg0: memref<2x16x64xf32, #tpu.memory_space<vmem>>, %arg1: memref<192x128xbf16, #tpu.memory_space<vmem>>, %arg2: memref<384x128xbf16, #tpu.memory_space<vmem>>, %arg3: memref<64x128xbf16, #tpu.memory_space<vmem>>, %arg4: memref<128x128xbf16, #tpu.memory_space<vmem>>, %arg5: memref<128x4xbf16, #tpu.memory_space<vmem>>, %arg6: memref<4x128xbf16, #tpu.memory_space<vmem>>, %arg7: memref<128x128xf32, #tpu.memory_space<vmem>>, %arg8: memref<1x128xf32, #tpu.memory_space<vmem>>, %arg9: memref<1x128xf32, #tpu.memory_space<vmem>>, %arg10: memref<1x128xf32, #tpu.memory_space<vmem>>, %arg11: memref<1x128xf32, #tpu.memory_space<vmem>>, %arg12: memref<1x128xf32, #tpu.memory_space<vmem>>, %arg13: memref<1x128xf32, #tpu.memory_space<vmem>>, %arg14: memref<2x16x128xf32, #tpu.memory_space<vmem>>) attributes {dimension_semantics = [], scalar_prefetch = 0 : i64, scratch_operands = 0 : i64, tpu.core_type = #tpu.core_type<tc>} {
    %c0 = arith.constant 0 : index
    %c0_0 = arith.constant 0 : index
    %c0_1 = arith.constant 0 : index
    %0 = vector.load %arg0[%c0, %c0_0, %c0_1] : memref<2x16x64xf32, #tpu.memory_space<vmem>>, vector<2x16x64xf32>
    %cst = arith.constant 0.000000e+00 : f32
    %1 = vector.broadcast %cst : f32 to vector<2x1x64xf32>
    %2 = vector.extract_strided_slice %0 {offsets = [0, 0, 0], sizes = [2, 15, 64], strides = [1, 1, 1]} : vector<2x16x64xf32> to vector<2x15x64xf32>
    %3 = tpu.concatenate %1, %2 in 1 : vector<2x1x64xf32>, vector<2x15x64xf32> -> vector<2x16x64xf32>
    %4 = vector.extract_strided_slice %0 {offsets = [0, 1, 0], sizes = [2, 15, 64], strides = [1, 1, 1]} : vector<2x16x64xf32> to vector<2x15x64xf32>
    %5 = tpu.concatenate %4, %1 in 1 : vector<2x15x64xf32>, vector<2x1x64xf32> -> vector<2x16x64xf32>
    %6 = tpu.concatenate %3, %0, %5 in 2 : vector<2x16x64xf32>, vector<2x16x64xf32>, vector<2x16x64xf32> -> vector<2x16x192xf32>
    %7 = vector.shape_cast %6 : vector<2x16x192xf32> to vector<32x192xf32>
    %8 = arith.truncf %7 : vector<32x192xf32> to vector<32x192xbf16>
    %c0_2 = arith.constant 0 : index
    %c0_3 = arith.constant 0 : index
    %9 = vector.load %arg1[%c0_2, %c0_3] : memref<192x128xbf16, #tpu.memory_space<vmem>>, vector<192x128xbf16>
    %cst_4 = arith.constant dense<0.000000e+00> : vector<32x128xf32>
    %10 = tpu.matmul %8, %9, %cst_4 {dimension_numbers = #tpu.dot_dimension_numbers<[1], [0], [0], [1], [0, 0, 1, 1], [], []>} : vector<32x192xbf16>, vector<192x128xbf16>, vector<32x128xf32> -> vector<32x128xf32>
    %cst_5 = arith.constant dense<0.000000e+00> : vector<128xf32>
    %11 = vector.multi_reduction <add>, %10, %cst_5 [0] : vector<32x128xf32> to vector<128xf32>
    %12 = vector.shape_cast %11 : vector<128xf32> to vector<1x128xf32>
    %cst_6 = arith.constant 3.200000e+01 : f32
    %13 = vector.broadcast %cst_6 : f32 to vector<1x128xf32>
    %14 = arith.divf %12, %13 : vector<1x128xf32>
    %15 = arith.mulf %10, %10 : vector<32x128xf32>
    %cst_7 = arith.constant dense<0.000000e+00> : vector<128xf32>
    %16 = vector.multi_reduction <add>, %15, %cst_7 [0] : vector<32x128xf32> to vector<128xf32>
    %17 = vector.shape_cast %16 : vector<128xf32> to vector<1x128xf32>
    %cst_8 = arith.constant 3.200000e+01 : f32
    %18 = vector.broadcast %cst_8 : f32 to vector<1x128xf32>
    %19 = arith.divf %17, %18 : vector<1x128xf32>
    %20 = tpu.concatenate %14, %19 in 0 : vector<1x128xf32>, vector<1x128xf32> -> vector<2x128xf32>
    %c0_9 = arith.constant 0 : index
    %c0_10 = arith.constant 0 : index
    %21 = vector.load %arg7[%c0_9, %c0_10] : memref<128x128xf32, #tpu.memory_space<vmem>>, vector<128x128xf32>
    %cst_11 = arith.constant dense<0.000000e+00> : vector<2x128xf32>
    %22 = tpu.matmul %20, %21, %cst_11 {dimension_numbers = #tpu.dot_dimension_numbers<[1], [0], [0], [1], [0, 0, 1, 1], [], []>} : vector<2x128xf32>, vector<128x128xf32>, vector<2x128xf32> -> vector<2x128xf32>
    %23 = vector.extract_strided_slice %22 {offsets = [0, 0], sizes = [1, 128], strides = [1, 1]} : vector<2x128xf32> to vector<1x128xf32>
    %24 = vector.extract_strided_slice %22 {offsets = [1, 0], sizes = [1, 128], strides = [1, 1]} : vector<2x128xf32> to vector<1x128xf32>
    %25 = arith.mulf %23, %23 : vector<1x128xf32>
    %26 = arith.subf %24, %25 : vector<1x128xf32>
    %c0_12 = arith.constant 0 : index
    %c0_13 = arith.constant 0 : index
    %27 = vector.load %arg8[%c0_12, %c0_13] : memref<1x128xf32, #tpu.memory_space<vmem>>, vector<1x128xf32>
    %cst_14 = arith.constant 9.99999974E-6 : f32
    %28 = vector.broadcast %cst_14 : f32 to vector<1x128xf32>
    %29 = arith.addf %26, %28 : vector<1x128xf32>
    %30 = math.rsqrt %29 : vector<1x128xf32>
    %31 = arith.mulf %27, %30 : vector<1x128xf32>
    %c0_15 = arith.constant 0 : index
    %c0_16 = arith.constant 0 : index
    %32 = vector.load %arg9[%c0_15, %c0_16] : memref<1x128xf32, #tpu.memory_space<vmem>>, vector<1x128xf32>
    %33 = arith.mulf %23, %31 : vector<1x128xf32>
    %34 = arith.subf %32, %33 : vector<1x128xf32>
    %35 = vector.broadcast %31 : vector<1x128xf32> to vector<32x128xf32>
    %36 = arith.mulf %10, %35 : vector<32x128xf32>
    %37 = vector.broadcast %34 : vector<1x128xf32> to vector<32x128xf32>
    %38 = arith.addf %36, %37 : vector<32x128xf32>
    %cst_17 = arith.constant 0.000000e+00 : f32
    %39 = vector.broadcast %cst_17 : f32 to vector<32x128xf32>
    %40 = arith.maximumf %38, %39 : vector<32x128xf32>
    %41 = vector.shape_cast %40 : vector<32x128xf32> to vector<2x16x128xf32>
    %cst_18 = arith.constant 0.000000e+00 : f32
    %42 = vector.broadcast %cst_18 : f32 to vector<2x1x128xf32>
    %43 = vector.extract_strided_slice %41 {offsets = [0, 0, 0], sizes = [2, 15, 128], strides = [1, 1, 1]} : vector<2x16x128xf32> to vector<2x15x128xf32>
    %44 = tpu.concatenate %42, %43 in 1 : vector<2x1x128xf32>, vector<2x15x128xf32> -> vector<2x16x128xf32>
    %45 = vector.extract_strided_slice %41 {offsets = [0, 1, 0], sizes = [2, 15, 128], strides = [1, 1, 1]} : vector<2x16x128xf32> to vector<2x15x128xf32>
    %46 = tpu.concatenate %45, %42 in 1 : vector<2x15x128xf32>, vector<2x1x128xf32> -> vector<2x16x128xf32>
    %47 = tpu.concatenate %44, %41, %46 in 2 : vector<2x16x128xf32>, vector<2x16x128xf32>, vector<2x16x128xf32> -> vector<2x16x384xf32>
    %48 = vector.shape_cast %47 : vector<2x16x384xf32> to vector<32x384xf32>
    %49 = arith.truncf %48 : vector<32x384xf32> to vector<32x384xbf16>
    %c0_19 = arith.constant 0 : index
    %c0_20 = arith.constant 0 : index
    %50 = vector.load %arg2[%c0_19, %c0_20] : memref<384x128xbf16, #tpu.memory_space<vmem>>, vector<384x128xbf16>
    %cst_21 = arith.constant dense<0.000000e+00> : vector<32x128xf32>
    %51 = tpu.matmul %49, %50, %cst_21 {dimension_numbers = #tpu.dot_dimension_numbers<[1], [0], [0], [1], [0, 0, 1, 1], [], []>} : vector<32x384xbf16>, vector<384x128xbf16>, vector<32x128xf32> -> vector<32x128xf32>
    %cst_22 = arith.constant dense<0.000000e+00> : vector<128xf32>
    %52 = vector.multi_reduction <add>, %51, %cst_22 [0] : vector<32x128xf32> to vector<128xf32>
    %53 = vector.shape_cast %52 : vector<128xf32> to vector<1x128xf32>
    %cst_23 = arith.constant 3.200000e+01 : f32
    %54 = vector.broadcast %cst_23 : f32 to vector<1x128xf32>
    %55 = arith.divf %53, %54 : vector<1x128xf32>
    %56 = arith.mulf %51, %51 : vector<32x128xf32>
    %cst_24 = arith.constant dense<0.000000e+00> : vector<128xf32>
    %57 = vector.multi_reduction <add>, %56, %cst_24 [0] : vector<32x128xf32> to vector<128xf32>
    %58 = vector.shape_cast %57 : vector<128xf32> to vector<1x128xf32>
    %cst_25 = arith.constant 3.200000e+01 : f32
    %59 = vector.broadcast %cst_25 : f32 to vector<1x128xf32>
    %60 = arith.divf %58, %59 : vector<1x128xf32>
    %61 = tpu.concatenate %55, %60 in 0 : vector<1x128xf32>, vector<1x128xf32> -> vector<2x128xf32>
    %c0_26 = arith.constant 0 : index
    %c0_27 = arith.constant 0 : index
    %62 = vector.load %arg7[%c0_26, %c0_27] : memref<128x128xf32, #tpu.memory_space<vmem>>, vector<128x128xf32>
    %cst_28 = arith.constant dense<0.000000e+00> : vector<2x128xf32>
    %63 = tpu.matmul %61, %62, %cst_28 {dimension_numbers = #tpu.dot_dimension_numbers<[1], [0], [0], [1], [0, 0, 1, 1], [], []>} : vector<2x128xf32>, vector<128x128xf32>, vector<2x128xf32> -> vector<2x128xf32>
    %64 = vector.extract_strided_slice %63 {offsets = [0, 0], sizes = [1, 128], strides = [1, 1]} : vector<2x128xf32> to vector<1x128xf32>
    %65 = vector.extract_strided_slice %63 {offsets = [1, 0], sizes = [1, 128], strides = [1, 1]} : vector<2x128xf32> to vector<1x128xf32>
    %66 = arith.mulf %64, %64 : vector<1x128xf32>
    %67 = arith.subf %65, %66 : vector<1x128xf32>
    %c0_29 = arith.constant 0 : index
    %c0_30 = arith.constant 0 : index
    %68 = vector.load %arg10[%c0_29, %c0_30] : memref<1x128xf32, #tpu.memory_space<vmem>>, vector<1x128xf32>
    %cst_31 = arith.constant 9.99999974E-6 : f32
    %69 = vector.broadcast %cst_31 : f32 to vector<1x128xf32>
    %70 = arith.addf %67, %69 : vector<1x128xf32>
    %71 = math.rsqrt %70 : vector<1x128xf32>
    %72 = arith.mulf %68, %71 : vector<1x128xf32>
    %c0_32 = arith.constant 0 : index
    %c0_33 = arith.constant 0 : index
    %73 = vector.load %arg11[%c0_32, %c0_33] : memref<1x128xf32, #tpu.memory_space<vmem>>, vector<1x128xf32>
    %74 = arith.mulf %64, %72 : vector<1x128xf32>
    %75 = arith.subf %73, %74 : vector<1x128xf32>
    %76 = vector.broadcast %72 : vector<1x128xf32> to vector<32x128xf32>
    %77 = arith.mulf %51, %76 : vector<32x128xf32>
    %78 = vector.broadcast %75 : vector<1x128xf32> to vector<32x128xf32>
    %79 = arith.addf %77, %78 : vector<32x128xf32>
    %80 = vector.shape_cast %0 : vector<2x16x64xf32> to vector<32x64xf32>
    %81 = arith.truncf %80 : vector<32x64xf32> to vector<32x64xbf16>
    %c0_34 = arith.constant 0 : index
    %c0_35 = arith.constant 0 : index
    %82 = vector.load %arg3[%c0_34, %c0_35] : memref<64x128xbf16, #tpu.memory_space<vmem>>, vector<64x128xbf16>
    %cst_36 = arith.constant dense<0.000000e+00> : vector<32x128xf32>
    %83 = tpu.matmul %81, %82, %cst_36 {dimension_numbers = #tpu.dot_dimension_numbers<[1], [0], [0], [1], [0, 0, 1, 1], [], []>} : vector<32x64xbf16>, vector<64x128xbf16>, vector<32x128xf32> -> vector<32x128xf32>
    %cst_37 = arith.constant dense<0.000000e+00> : vector<128xf32>
    %84 = vector.multi_reduction <add>, %83, %cst_37 [0] : vector<32x128xf32> to vector<128xf32>
    %85 = vector.shape_cast %84 : vector<128xf32> to vector<1x128xf32>
    %cst_38 = arith.constant 3.200000e+01 : f32
    %86 = vector.broadcast %cst_38 : f32 to vector<1x128xf32>
    %87 = arith.divf %85, %86 : vector<1x128xf32>
    %88 = arith.mulf %83, %83 : vector<32x128xf32>
    %cst_39 = arith.constant dense<0.000000e+00> : vector<128xf32>
    %89 = vector.multi_reduction <add>, %88, %cst_39 [0] : vector<32x128xf32> to vector<128xf32>
    %90 = vector.shape_cast %89 : vector<128xf32> to vector<1x128xf32>
    %cst_40 = arith.constant 3.200000e+01 : f32
    %91 = vector.broadcast %cst_40 : f32 to vector<1x128xf32>
    %92 = arith.divf %90, %91 : vector<1x128xf32>
    %93 = tpu.concatenate %87, %92 in 0 : vector<1x128xf32>, vector<1x128xf32> -> vector<2x128xf32>
    %c0_41 = arith.constant 0 : index
    %c0_42 = arith.constant 0 : index
    %94 = vector.load %arg7[%c0_41, %c0_42] : memref<128x128xf32, #tpu.memory_space<vmem>>, vector<128x128xf32>
    %cst_43 = arith.constant dense<0.000000e+00> : vector<2x128xf32>
    %95 = tpu.matmul %93, %94, %cst_43 {dimension_numbers = #tpu.dot_dimension_numbers<[1], [0], [0], [1], [0, 0, 1, 1], [], []>} : vector<2x128xf32>, vector<128x128xf32>, vector<2x128xf32> -> vector<2x128xf32>
    %96 = vector.extract_strided_slice %95 {offsets = [0, 0], sizes = [1, 128], strides = [1, 1]} : vector<2x128xf32> to vector<1x128xf32>
    %97 = vector.extract_strided_slice %95 {offsets = [1, 0], sizes = [1, 128], strides = [1, 1]} : vector<2x128xf32> to vector<1x128xf32>
    %98 = arith.mulf %96, %96 : vector<1x128xf32>
    %99 = arith.subf %97, %98 : vector<1x128xf32>
    %c0_44 = arith.constant 0 : index
    %c0_45 = arith.constant 0 : index
    %100 = vector.load %arg12[%c0_44, %c0_45] : memref<1x128xf32, #tpu.memory_space<vmem>>, vector<1x128xf32>
    %cst_46 = arith.constant 9.99999974E-6 : f32
    %101 = vector.broadcast %cst_46 : f32 to vector<1x128xf32>
    %102 = arith.addf %99, %101 : vector<1x128xf32>
    %103 = math.rsqrt %102 : vector<1x128xf32>
    %104 = arith.mulf %100, %103 : vector<1x128xf32>
    %c0_47 = arith.constant 0 : index
    %c0_48 = arith.constant 0 : index
    %105 = vector.load %arg13[%c0_47, %c0_48] : memref<1x128xf32, #tpu.memory_space<vmem>>, vector<1x128xf32>
    %106 = arith.mulf %96, %104 : vector<1x128xf32>
    %107 = arith.subf %105, %106 : vector<1x128xf32>
    %108 = vector.broadcast %104 : vector<1x128xf32> to vector<32x128xf32>
    %109 = arith.mulf %83, %108 : vector<32x128xf32>
    %110 = vector.broadcast %107 : vector<1x128xf32> to vector<32x128xf32>
    %111 = arith.addf %109, %110 : vector<32x128xf32>
    %112 = arith.truncf %111 : vector<32x128xf32> to vector<32x128xbf16>
    %c0_49 = arith.constant 0 : index
    %c0_50 = arith.constant 0 : index
    %113 = vector.load %arg4[%c0_49, %c0_50] : memref<128x128xbf16, #tpu.memory_space<vmem>>, vector<128x128xbf16>
    %cst_51 = arith.constant dense<0.000000e+00> : vector<32x128xf32>
    %114 = tpu.matmul %112, %113, %cst_51 {dimension_numbers = #tpu.dot_dimension_numbers<[1], [0], [0], [1], [0, 0, 1, 1], [], []>} : vector<32x128xbf16>, vector<128x128xbf16>, vector<32x128xf32> -> vector<32x128xf32>
    %115 = arith.negf %114 : vector<32x128xf32>
    %116 = math.exp %115 : vector<32x128xf32>
    %cst_52 = arith.constant 1.000000e+00 : f32
    %117 = vector.broadcast %cst_52 : f32 to vector<32x128xf32>
    %118 = arith.addf %117, %116 : vector<32x128xf32>
    %119 = arith.divf %117, %118 : vector<32x128xf32>
    %120 = arith.mulf %111, %119 : vector<32x128xf32>
    %121 = vector.shape_cast %111 : vector<32x128xf32> to vector<2x16x128xf32>
    %cst_53 = arith.constant dense<0.000000e+00> : vector<2x128xf32>
    %122 = vector.multi_reduction <add>, %121, %cst_53 [1] : vector<2x16x128xf32> to vector<2x128xf32>
    %cst_54 = arith.constant 1.600000e+01 : f32
    %123 = vector.broadcast %cst_54 : f32 to vector<2x128xf32>
    %124 = arith.divf %122, %123 : vector<2x128xf32>
    %125 = arith.truncf %124 : vector<2x128xf32> to vector<2x128xbf16>
    %c0_55 = arith.constant 0 : index
    %c0_56 = arith.constant 0 : index
    %126 = vector.load %arg5[%c0_55, %c0_56] : memref<128x4xbf16, #tpu.memory_space<vmem>>, vector<128x4xbf16>
    %cst_57 = arith.constant dense<0.000000e+00> : vector<2x4xf32>
    %127 = tpu.matmul %125, %126, %cst_57 {dimension_numbers = #tpu.dot_dimension_numbers<[1], [0], [0], [1], [0, 0, 1, 1], [], []>} : vector<2x128xbf16>, vector<128x4xbf16>, vector<2x4xf32> -> vector<2x4xf32>
    %128 = arith.truncf %127 : vector<2x4xf32> to vector<2x4xbf16>
    %c0_58 = arith.constant 0 : index
    %c0_59 = arith.constant 0 : index
    %129 = vector.load %arg6[%c0_58, %c0_59] : memref<4x128xbf16, #tpu.memory_space<vmem>>, vector<4x128xbf16>
    %cst_60 = arith.constant dense<0.000000e+00> : vector<2x128xf32>
    %130 = tpu.matmul %128, %129, %cst_60 {dimension_numbers = #tpu.dot_dimension_numbers<[1], [0], [0], [1], [0, 0, 1, 1], [], []>} : vector<2x4xbf16>, vector<4x128xbf16>, vector<2x128xf32> -> vector<2x128xf32>
    %131 = arith.negf %130 : vector<2x128xf32>
    %132 = math.exp %131 : vector<2x128xf32>
    %cst_61 = arith.constant 1.000000e+00 : f32
    %133 = vector.broadcast %cst_61 : f32 to vector<2x128xf32>
    %134 = arith.addf %133, %132 : vector<2x128xf32>
    %135 = arith.divf %133, %134 : vector<2x128xf32>
    %136 = vector.shape_cast %135 : vector<2x128xf32> to vector<2x1x128xf32>
    %137 = vector.broadcast %136 : vector<2x1x128xf32> to vector<2x16x128xf32>
    %138 = arith.mulf %121, %137 : vector<2x16x128xf32>
    %139 = vector.shape_cast %79 : vector<32x128xf32> to vector<2x16x128xf32>
    %140 = arith.addf %139, %138 : vector<2x16x128xf32>
    %141 = vector.shape_cast %120 : vector<32x128xf32> to vector<2x16x128xf32>
    %142 = arith.addf %140, %141 : vector<2x16x128xf32>
    %cst_62 = arith.constant 0.000000e+00 : f32
    %143 = vector.broadcast %cst_62 : f32 to vector<2x16x128xf32>
    %144 = arith.maximumf %142, %143 : vector<2x16x128xf32>
    %c0_63 = arith.constant 0 : index
    %c0_64 = arith.constant 0 : index
    %c0_65 = arith.constant 0 : index
    %145 = vector.load %arg14[%c0_63, %c0_64, %c0_65] : memref<2x16x128xf32, #tpu.memory_space<vmem>>, vector<2x16x128xf32>
    tpu.vector_store %arg14[%c0_63, %c0_64, %c0_65], %144 {strides = array<i32>} : memref<2x16x128xf32, #tpu.memory_space<vmem>>, vector<2x16x128xf32>,
    return
  }
}

</mosaic_0001>

<bundles_post_ra>
// kernel: residual_block.1
= control target key start
LH: loop header
LB: loop body
LE: loop exit
PB: predicated region body
PF: predicated region fallthrough
CT: control target
= control target key end

     0   :  { %v2057_v3 = vmov 0   ;;  %vm69_vm0 = vcmask 1046528   ;;  %s2058_s23 = smov 64   ;;  %vm94_vm1 = vcmask 523264   ;;  %v2059_v18 = vmov 0.0|0.0   ;;  %s2663_s0 = inlined_call_operand.vmem [shape: f32[2,16,64], index: 0, kind: input, shape index: {}]   ;;  %s2664_s1 = inlined_call_operand.vmem [shape: bf16[192,128], index: 1, kind: input, shape index: {}]   ;;  %s2665_s7 = inlined_call_operand.vmem [shape: f32[128,128], index: 7, kind: input, shape index: {}]   ;;  %s2666_s2 = inlined_call_operand.vmem [shape: bf16[384,128], index: 2, kind: input, shape index: {}]   ;;  %s2667_s8 = inlined_call_operand.vmem [shape: f32[1,128], index: 8, kind: input, shape index: {}]   ;;  %s2668_s9 = inlined_call_operand.vmem [shape: f32[1,128], index: 9, kind: input, shape index: {}]   ;;  %s2669_s3 = inlined_call_operand.vmem [shape: bf16[64,128], index: 3, kind: input, shape index: {}]   ;;  %s2670_s4 = inlined_call_operand.vmem [shape: bf16[128,128], index: 4, kind: input, shape index: {}]   ;;  %s2671_s5 = inlined_call_operand.vmem [shape: bf16[128,4], index: 5, kind: input, shape index: {}]   ;;  %s2672_s12 = inlined_call_operand.vmem [shape: f32[1,128], index: 12, kind: input, shape index: {}]   ;;  %s2673_s13 = inlined_call_operand.vmem [shape: f32[1,128], index: 13, kind: input, shape index: {}]   ;;  %s2674_s6 = inlined_call_operand.vmem [shape: bf16[4,128], index: 6, kind: input, shape index: {}]   ;;  %s2675_s10 = inlined_call_operand.vmem [shape: f32[1,128], index: 10, kind: input, shape index: {}]   ;;  %s2676_s11 = inlined_call_operand.vmem [shape: f32[1,128], index: 11, kind: input, shape index: {}]   ;;  %s2677_s14 = inlined_call_operand.vmem [shape: f32[2,16,128], index: 14, kind: output, shape index: {}]  }
   0x1   :  { %v2142_v0 = vld [vmem:[%s2663_s0] sm:$0xff]  ;;  %v2147_v1 = vld [vmem:[%s2663_s0 + $0x8] sm:$0xff]  ;;  %v2152_v2 = vld [vmem:[%s2663_s0 + $0x10] sm:$0xff]  ;;  %205 = vmatprep.subr.bf16.mxu0 %v2057_v3  ;;  %1886 = vmatprep.subr.bf16.mxu1 %v2059_v18  ;;  %vm56_vm2 = vcmask 1040384   ;;  %vm2060_vm3 = vmmov 0   ;;  %vm2063_vm5 = vmmov 1  }
   0x2   :  { %v1965_v4 = vpack.i.bf16 %v2147_v1, %v2142_v0  ;;  %v2159_v5 = vld [vmem:[%s2663_s0 + $0x18] sm:$0xff]  ;;  %v1975_v6 = vld [vmem:[%s2664_s1] sm:$0xff]   ;;  %v1976_v8 = vld [vmem:[%s2664_s1 + $0x8] sm:$0xff]   ;;  %v70_v9 = vrot.slane %v2142_v0, 1  ;;  %v71_v10 = vrot.slane %v2147_v1, 1  ;;  %v58_v28 = vrot.slane %v2147_v1, 7 }
   0x3   :  { %v1970_v7 = vpack.i.bf16 %v2159_v5, %v2152_v2  ;;  %206 = vmatpush1.bf16.msra.mxu0 %v1975_v6  ;;  %v1977_v13 = vld [vmem:[%s2664_s1 + $0x10] sm:$0xff]   ;;  %v1978_v15 = vld [vmem:[%s2664_s1 + $0x18] sm:$0xff]   ;;  %v280_v16 = vld [vmem:[%s2665_s7] sm:$0xff]  ;;  %v57_v29 = vrot.slane %v2142_v0, 7  ;;  %v73_v30 = vrot.slane %v2152_v2, 1  ;;  %v74_v31 = vrot.slane %v2159_v5, 1 }
   0x4   :  { %1966 = vrot.lane.b32.xlu0 %v1965_v4, %s2058_s23  ;;  %207 = vmatprep.subr.bf16.mxu0 %v2057_v3  ;;  %v72_v11 = vsel %vm69_vm0, %v70_v9, %v71_v10  ;;  %v80_v12 = vsel %vm69_vm0, %v71_v10, 0.0  ;;  %v281_v17 = vld [vmem:[%s2665_s7 + $0x8] sm:$0xff]  ;;  %v1979_v20 = vld [vmem:[%s2664_s1 + $0x20] sm:$0xff]   ;;  %v1981_v22 = vld [vmem:[%s2664_s1 + $0x30] sm:$0xff]   ;;  %v60_v37 = vrot.slane %v2152_v2, 7  ;;  %v61_v38 = vrot.slane %v2159_v5, 7 }
   0x5   :  { %v100_v14 = vpack.c.bf16 %v80_v12, %v72_v11  ;;  %v2187_v19 = vpack.c.bf16 %v281_v17, %v280_v16  ;;  %v1980_v21 = vld [vmem:[%s2664_s1 + $0x28] sm:$0xff]   ;;  %v1982_v23 = vld [vmem:[%s2664_s1 + $0x38] sm:$0xff]   ;;  %v1983_v24 = vld [vmem:[%s2664_s1 + $0x40] sm:$0xff]   ;;  %v59_v32 = vsel %vm56_vm2, %v57_v29, %v58_v28  ;;  %v67_v33 = vsel %vm56_vm2, 0.0, %v57_v29 }
   0x6   :  { %v1984_v25 = vld [vmem:[%s2664_s1 + $0x48] sm:$0xff]   ;;  %v1985_v26 = vld [vmem:[%s2664_s1 + $0x50] sm:$0xff]   ;;  %v1986_v27 = vld [vmem:[%s2664_s1 + $0x58] sm:$0xff]   ;;  %v75_v35 = vsel %vm69_vm0, %v73_v30, %v74_v31  ;;  %v81_v36 = vsel %vm69_vm0, %v74_v31, 0.0  ;;  %v62_v46 = vsel %vm56_vm2, %v60_v37, %v61_v38  ;;  %v68_v47 = vsel %vm56_vm2, 0.0, %v60_v37 }
   0x7   :  { %208 = vmatpush1.bf16.msra.mxu0 %v1976_v8  ;;  %1519 = vmatprep.mubr.msk.bf16.mxu0 %vm94_vm1, %v100_v14  ;;  %v102_v43 = vpack.c.bf16 %v81_v36, %v75_v35  ;;  %v282_v53 = vld [vmem:[%s2665_s7 + $0x10] sm:$0xff]  ;;  %v283_v54 = vld [vmem:[%s2665_s7 + $0x18] sm:$0xff]  ;;  %v284_v56 = vld [vmem:[%s2665_s7 + $0x20] sm:$0xff]  ;;  %vm1302_vm8 = vcmask 1041409   ;;  %vm1400_vm9 = vcmask 1041408   ;;  %vm1396_vm10 = vcmask 31744  }
   0x8   :  { %1971 = vrot.lane.b32.xlu0 %v1970_v7, %s2058_s23  ;;  %209 = vmatprep.subr.bf16.mxu0 %v2057_v3  ;;  %v2238_v55 = vpack.c.bf16 %v283_v54, %v282_v53  ;;  %v285_v57 = vld [vmem:[%s2665_s7 + $0x28] sm:$0xff]  ;;  %v286_v59 = vld [vmem:[%s2665_s7 + $0x30] sm:$0xff]  ;;  %v287_v60 = vld [vmem:[%s2665_s7 + $0x38] sm:$0xff] }
   0x9   :  { %1888 = vmatpush3.bf16.msra.mxu1 %v2187_v19  ;;  %v2248_v58 = vpack.c.bf16 %v285_v57, %v284_v56  ;;  %v2258_v61 = vpack.c.bf16 %v287_v60, %v286_v59  ;;  %v288_v62 = vld [vmem:[%s2665_s7 + $0x40] sm:$0xff]  ;;  %v289_v63 = vld [vmem:[%s2665_s7 + $0x48] sm:$0xff]  ;;  %v290_v4 = vld [vmem:[%s2665_s7 + $0x50] sm:$0xff] }
   0xa   :  { %1889 = vmatprep.subr.bf16.mxu1 %v2059_v18  ;;  %v291_v6 = vld [vmem:[%s2665_s7 + $0x58] sm:$0xff]  ;;  %v292_v8 = vld [vmem:[%s2665_s7 + $0x60] sm:$0xff]  ;;  %v293_v9 = vld [vmem:[%s2665_s7 + $0x68] sm:$0xff] }
   0xb   :  { %210 = vmatpush1.bf16.msra.mxu0 %v1977_v13  ;;  %v2278_v7 = vpack.c.bf16 %v291_v6, %v290_v4  ;;  %v2288_v10 = vpack.c.bf16 %v293_v9, %v292_v8  ;;  %v294_v11 = vld [vmem:[%s2665_s7 + $0x70] sm:$0xff]  ;;  %v295_v12 = vld [vmem:[%s2665_s7 + $0x78] sm:$0xff]  ;;  %v2061_v13 = vmov 0.0   ;;  %v1990_v53 = vld [vmem:[%s2666_s2 + $0x48] sm:$0xff]  }
   0xc   :  { %211 = vmatprep.subr.bf16.mxu0 %v2057_v3  ;;  %1735 = vmatprep.mubr.msk.f32.mxu1 %vm2060_vm3, %v2061_v13  ;;  %v2299_v14 = vpack.c.bf16 %v295_v12, %v294_v11  ;;  %v1991_v54 = vld [vmem:[%s2666_s2 + $0x8] sm:$0xff]   ;;  %v1993_v57 = vld [vmem:[%s2666_s2 + $0x50] sm:$0xff]   ;;  %v1998_v4 = vld [vmem:[%s2666_s2 + $0x98] sm:$0xff]  }
   0xd   :  { %1891 = vmatpush3.bf16.msra.mxu1 %v2238_v55  ;;  %v1992_v56 = vld [vmem:[%s2666_s2 + $0x88] sm:$0xff]   ;;  %v1994_v59 = vld [vmem:[%s2666_s2 + $0x10] sm:$0xff]   ;;  %v1999_v6 = vld [vmem:[%s2666_s2 + $0x60] sm:$0xff]  }
   0xe   :  { %1892 = vmatprep.subr.bf16.mxu1 %v2059_v18  ;;  %v1995_v60 = vld [vmem:[%s2666_s2 + $0x90] sm:$0xff]   ;;  %v2000_v8 = vld [vmem:[%s2666_s2 + $0x20] sm:$0xff]   ;;  %v2002_v11 = vld [vmem:[%s2666_s2 + $0x68] sm:$0xff]  }
   0xf   :  { %212 = vmatpush1.bf16.msra.mxu0 %v1978_v15  ;;  %v2001_v9 = vld [vmem:[%s2666_s2 + $0xa0] sm:$0xff]   ;;  %v2003_v12 = vld [vmem:[%s2666_s2 + $0x28] sm:$0xff]   ;;  %vm1545_vm4 = vmneg %vm56_vm2 }
  0x10   :  { %213 = vmatprep.subr.bf16.mxu0 %v2057_v3  ;;  %vm2418_vm6 = vmpackc.low %vm2063_vm5, %vm1545_vm4 }
  0x11   :  { %1894 = vmatpush3.bf16.msra.mxu1 %v2248_v58  ;;  %vm1553_vm7 = vmpackc.low %vm69_vm0, %vm2063_vm5 }
  0x12   :  { %1895 = vmatprep.subr.bf16.mxu1 %v2059_v18 }
  0x13   :  { %214 = vmatpush1.bf16.msra.mxu0 %v1979_v20 }
  0x14   :  { %215 = vmatprep.subr.bf16.mxu0 %v2057_v3 }
  0x15   :  { %1897 = vmatpush3.bf16.msra.mxu1 %v2258_v61 }
  0x16   :  { %1898 = vmatprep.subr.bf16.mxu1 %v2059_v18 }
  0x17   :  { %216 = vmatpush1.bf16.msra.mxu0 %v1980_v21 }
  0x18   :  { %217 = vmatprep.subr.bf16.mxu0 %v2057_v3 }
  0x1b   :  { %218 = vmatpush1.bf16.msra.mxu0 %v1981_v22 }
  0x1c   :  { %219 = vmatprep.subr.bf16.mxu0 %v2057_v3 }
  0x1f   :  { %220 = vmatpush1.bf16.msra.mxu0 %v1982_v23 }
  0x20   :  { %221 = vmatprep.subr.bf16.mxu0 %v2057_v3 }
  0x23   :  { %222 = vmatpush1.bf16.msra.mxu0 %v1983_v24 }
  0x24   :  { %223 = vmatprep.subr.bf16.mxu0 %v2057_v3 }
  0x27   :  { %224 = vmatpush1.bf16.msra.mxu0 %v1984_v25 }
  0x28   :  { %225 = vmatprep.subr.bf16.mxu0 %v2057_v3 }
  0x2b   :  { %226 = vmatpush1.bf16.msra.mxu0 %v1985_v26 }
  0x2c   :  { %227 = vmatprep.subr.bf16.mxu0 %v2057_v3  ;;  %v2268_v3 = vpack.c.bf16 %v289_v63, %v288_v62  ;;  %v1996_v62 = vld [vmem:[%s2666_s2 + $0x58] sm:$0xff]  }
  0x2d   :  { %v1997_v63 = vld [vmem:[%s2666_s2 + $0x18] sm:$0xff]  }
  0x2e   :  { %1900 = vmatpush3.bf16.msra.mxu1 %v2268_v3 }
  0x2f   :  { %228 = vmatpush1.bf16.msra.mxu0 %v1986_v27  ;;  %1901 = vmatprep.subr.bf16.mxu1 %v2059_v18 }
  0x32   :  { %1903 = vmatpush3.bf16.msra.mxu1 %v2278_v7 }
  0x33   :  { %1904 = vmatprep.subr.bf16.mxu1 %v2059_v18 }
  0x36   :  { %1906 = vmatpush3.bf16.msra.mxu1 %v2288_v10 }
  0x37   :  { %1907 = vmatprep.subr.bf16.mxu1 %v2059_v18 }
  0x3a   :  { %1909 = vmatpush3.bf16.msra.mxu1 %v2299_v14 }
  0x76   :  { %v1967_v34 = vpop.permute.xlu0 %1966 }
  0x77   :  { %v1969_v39 = vunpack.i.h.bf16 %v1967_v34  ;;  %v1968_v40 = vunpack.i.l.bf16 %v1967_v34 }
  0x79   :  { %v95_v41 = vsel %vm94_vm1, %v67_v33, %v1968_v40  ;;  %v96_v42 = vsel %vm94_vm1, %v59_v32, %v1969_v39 }
  0x7a   :  { %v99_v44 = vpack.c.bf16 %v96_v42, %v95_v41  ;;  %v1972_v45 = vpop.permute.xlu0 %1971 }
  0x7b   :  { %v1974_v48 = vunpack.i.h.bf16 %v1972_v45  ;;  %v1973_v49 = vunpack.i.l.bf16 %v1972_v45 }
  0x7c   :  { %238 = vmatmul.mubr.bf16.vlgmr.msra.gmra.mrb[0].mxu0 %v99_v44 }
  0x7d   :  { %1520 = vmatprep.mubr.msk.bf16.mxu0 %vm94_vm1, %v102_v43  ;;  %v97_v50 = vsel %vm94_vm1, %v68_v47, %v1973_v49  ;;  %v98_v51 = vsel %vm94_vm1, %v62_v46, %v1974_v48 }
  0x7e   :  { %v101_v52 = vpack.c.bf16 %v98_v51, %v97_v50  ;;  %v1987_v50 = vld [vmem:[%s2666_s2 + $0x40] sm:$0xff]  }
  0x7f   :  { %v1988_v51 = vld [vmem:[%s2666_s2] sm:$0xff]   ;;  %1604 = vmatprep.subr.bf16.mxu1 %v1987_v50 }
  0x84   :  { %246 = vmatmul.mubr.bf16.gmra.mrb[4].mxu0 %v101_v52  ;;  %v1989_v52 = vld [vmem:[%s2666_s2 + $0x80] sm:$0xff]  }
  0x85   :  { %1738 = vmatprep.subr.bf16.mxu0 %v1989_v52 }
  0x86   :  { %1739 = vmatpush3.bf16.msra.mxu0 %v1989_v52 }
  0x87   :  { %1740 = vmatprep.subr.bf16.mxu0 %v1992_v56 }
  0x8a   :  { %1741 = vmatpush3.bf16.msra.mxu0 %v1992_v56 }
  0x8b   :  { %1742 = vmatprep.subr.bf16.mxu0 %v1995_v60 }
  0x8e   :  { %1743 = vmatpush3.bf16.msra.mxu0 %v1995_v60 }
  0x8f   :  { %1744 = vmatprep.subr.bf16.mxu0 %v1998_v4 }
  0x92   :  { %1745 = vmatpush3.bf16.msra.mxu0 %v1998_v4 }
  0x93   :  { %1746 = vmatprep.subr.bf16.mxu0 %v2001_v9 }
  0x96   :  { %1747 = vmatpush3.bf16.msra.mxu0 %v2001_v9 }
 0x14f   :  { %v2303_v15 = vpop.f32.mrb[0].mxu0 }
 0x150   :  { %v241_v16 = vpop.f32.mrb[1].mxu0  ;;  %v265_v20 = vmul.f32 %v2303_v15, %v2303_v15 }
 0x151   :  { %v2305_v17 = vpop.f32.mrb[2].mxu0  ;;  %v2004_v16 = vld [vmem:[%s2666_s2 + $0xa8] sm:$0xff]  }
 0x152   :  { %v254_v21 = vadd.f32 %v2305_v17, %v2303_v15  ;;  %v266_v22 = vmul.f32 %v2305_v17, %v2305_v17  ;;  %v244_v23 = vpop.f32.mrb[3].mxu0  ;;  %1748 = vmatprep.subr.bf16.mxu0 %v2004_v16 }
 0x153   :  { %v2008_v23 = vld [vmem:[%s2666_s2 + $0x78] sm:$0xff]   ;;  %1749 = vmatpush3.bf16.msra.mxu0 %v2004_v16 }
 0x154   :  { %v269_v24 = vadd.f32 %v266_v22, %v265_v20  ;;  %v2005_v20 = vld [vmem:[%s2666_s2 + $0x70] sm:$0xff]  }
 0x155   :  { %v2006_v22 = vld [vmem:[%s2666_s2 + $0x30] sm:$0xff]  }
 0x157   :  { %v2313_v25 = vpop.f32.mrb[4].mxu0 }
 0x158   :  { %v255_v26 = vadd.f32 %v254_v21, %v2313_v25  ;;  %v267_v27 = vmul.f32 %v2313_v25, %v2313_v25  ;;  %v249_v28 = vpop.f32.mrb[5].mxu0  ;;  %v2007_v21 = vld [vmem:[%s2666_s2 + $0xb0] sm:$0xff]  }
 0x159   :  { %v2318_v29 = vpop.f32.mrb[6].mxu0  ;;  %1750 = vmatprep.subr.bf16.mxu0 %v2007_v21 }
 0x15a   :  { %v270_v30 = vadd.f32 %v269_v24, %v267_v27  ;;  %v256_v31 = vadd.f32 %v255_v26, %v2318_v29  ;;  %v268_v32 = vmul.f32 %v2318_v29, %v2318_v29  ;;  %v252_v33 = vpop.f32.mrb[7].mxu0  ;;  %v2009_v24 = vld [vmem:[%s2666_s2 + $0x38] sm:$0xff]   ;;  %1751 = vmatpush3.bf16.msra.mxu0 %v2007_v21 }
 0x15b   :  { %v2010_v26 = vld [vmem:[%s2666_s2 + $0xb8] sm:$0xff]  }
 0x15c   :  { %v257_v34 = vrot.slane %v256_v31, 4  ;;  %v271_v35 = vadd.f32 %v270_v30, %v268_v32  ;;  %1752 = vmatprep.subr.bf16.mxu0 %v2010_v26 }
 0x15e   :  { %v258_v36 = vadd.f32 %v257_v34, %v256_v31  ;;  %v272_v37 = vrot.slane %v271_v35, 4  ;;  %1753 = vmatpush3.bf16.msra.mxu0 %v2010_v26  ;;  %v2062_v34 = vmov 1966171168  }
 0x15f   :  { %1934 = vmatprep.subr.bf16.mxu0 %v2059_v18 }
 0x160   :  { %v259_v38 = vrot.slane %v258_v36, 2  ;;  %v273_v39 = vadd.f32 %v272_v37, %v271_v35  ;;  %v376_v35 = vunpack.c.l.s4 %v2062_v34 }
 0x162   :  { %v260_v40 = vadd.f32 %v259_v38, %v258_v36  ;;  %v274_v41 = vrot.slane %v273_v39, 2  ;;  %v378_v36 = vlaneseq  ;;  %v377_v37 = vunpack.c.0.s8 %v376_v35 }
 0x164   :  { %v261_v42 = vrot.slane %v260_v40, 1  ;;  %v275_v43 = vadd.f32 %v274_v41, %v273_v39  ;;  %v379_v38 = vshrl.u32 %v378_v36, 7 }
 0x166   :  { %v262_v44 = vadd.f32 %v261_v42, %v260_v40  ;;  %v276_v45 = vrot.slane %v275_v43, 1  ;;  %v2398_v39 = vsub.s32 %v377_v37, %v379_v38 }
 0x168   :  { %v277_v46 = vadd.f32 %v276_v45, %v275_v43  ;;  %v264_v47 = vmul.f32 0.03125, %v262_v44  ;;  %v371_v43 = vld [vmem:[%s2667_s8] sm:$0x1]  ;;  %v2405_v45 = vsub.s32 0, %v379_v38 }
 0x16a   :  { %v278_v48 = vmul.f32 0.03125, %v277_v46 }
 0x16c   :  { %v279_v49 = vsel %vm56_vm2, %v264_v47, %v278_v48  ;;  %v392_v47 = vld [vmem:[%s2668_s9] sm:$0x1] }
 0x16d   :  { %1736 = vmatmul.mubr.f32.vlgmr.msra.gmra.mrb[0].mxu1 %v279_v49 }
 0x16e   :  { %1605 = vmatpush3.bf16.msra.mxu1 %v1988_v51 }
 0x16f   :  { %1606 = vmatprep.subr.bf16.mxu1 %v1990_v53 }
 0x172   :  { %1607 = vmatpush3.bf16.msra.mxu1 %v1991_v54 }
 0x173   :  { %1608 = vmatprep.subr.bf16.mxu1 %v1993_v57 }
 0x176   :  { %1609 = vmatpush3.bf16.msra.mxu1 %v1994_v59 }
 0x177   :  { %1610 = vmatprep.subr.bf16.mxu1 %v1996_v62 }
 0x17a   :  { %1611 = vmatpush3.bf16.msra.mxu1 %v1997_v63 }
 0x17b   :  { %1612 = vmatprep.subr.bf16.mxu1 %v1999_v6 }
 0x17e   :  { %1613 = vmatpush3.bf16.msra.mxu1 %v2000_v8 }
 0x17f   :  { %1614 = vmatprep.subr.bf16.mxu1 %v2002_v11 }
 0x182   :  { %1615 = vmatpush3.bf16.msra.mxu1 %v2003_v12 }
 0x183   :  { %1616 = vmatprep.subr.bf16.mxu1 %v2005_v20 }
 0x186   :  { %1617 = vmatpush3.bf16.msra.mxu1 %v2006_v22 }
 0x187   :  { %1618 = vmatprep.subr.bf16.mxu1 %v2008_v23 }
 0x18a   :  { %1619 = vmatpush3.bf16.msra.mxu1 %v2009_v24 }
 0x18b   :  { %1910 = vmatprep.subr.bf16.mxu1 %v2059_v18 }
 0x240   :  { %v362_v27 = vpop.f32.mrb[0].mxu1 }
 0x241   :  { %v366_v28 = vmul.f32 %v362_v27, %v362_v27  ;;  %v1737_v30 = vpop.f32.mrb[1].mxu1 }
 0x243   :  { %v368_v31 = vrot.slane %v366_v28, 7 }
 0x245   :  { %v370_v32 = vsub.f32 %v362_v27, %v368_v31 }
 0x247   :  { %v372_v33 = vadd.f32 1e-05, %v370_v32 }
 0x249   :  { %2031 = vrsqrt.f32 %v372_v33 }
 0x253   :  { %v2032_v40 = vpop.eup %2031 }
 0x254   :  { %v381_v41 = vrot.slane %v2032_v40, %v2398_v39 }
 0x256   :  { %v382_v42 = vcombine.high %v381_v41, %v381_v41 }
 0x258   :  { %v389_v44 = vrot.slane %v382_v42, %v2398_v39 }
 0x25a   :  { %v391_v46 = vmul.f32 %v389_v44, %v371_v43 }
 0x25c   :  { %v393_v48 = vmul.f32 %v391_v46, %v362_v27  ;;  %v399_v49 = vrot.slane %v391_v46, %v2405_v45 }
 0x25e   :  { %v394_v50 = vsub.f32 %v392_v47, %v393_v48  ;;  %v401_v51 = vmul.f32 %v399_v49, %v2303_v15  ;;  %v402_v52 = vmul.f32 %v399_v49, %v2305_v17  ;;  %v403_v53 = vmul.f32 %v399_v49, %v2313_v25 }
 0x25f   :  { %v404_v54 = vmul.f32 %v399_v49, %v2318_v29 }
 0x260   :  { %v409_v56 = vrot.slane %v394_v50, %v2405_v45 }
 0x262   :  { %v411_v57 = vadd.f32 %v409_v56, %v401_v51  ;;  %v412_v59 = vadd.f32 %v409_v56, %v402_v52  ;;  %v413_v60 = vadd.f32 %v409_v56, %v403_v53  ;;  %v414_v62 = vadd.f32 %v409_v56, %v404_v54 }
 0x264   :  { %v415_v63 = vmax.f32 %v411_v57, 0.0  ;;  %v416_v4 = vmax.f32 %v412_v59, 0.0  ;;  %v417_v6 = vmax.f32 %v413_v60, 0.0  ;;  %v418_v8 = vmax.f32 %v414_v62, 0.0 }
 0x266   :  { %v423_v9 = vrot.slane %v415_v63, 7  ;;  %v424_v15 = vrot.slane %v416_v4, 7  ;;  %v448_v11 = vpack.c.bf16 %v416_v4, %v415_v63  ;;  %v435_v17 = vrot.slane %v415_v63, 1 }
 0x267   :  { %v436_v12 = vrot.slane %v416_v4, 1  ;;  %v438_v25 = vrot.slane %v417_v6, 1  ;;  %v439_v16 = vrot.slane %v418_v8, 1  ;;  %v451_v29 = vpack.c.bf16 %v418_v8, %v417_v6 }
 0x268   :  { %677 = vmatprep.mubr.bf16.mxu1 %v448_v11  ;;  %v425_v20 = vsel %vm56_vm2, %v423_v9, %v424_v15  ;;  %v426_v22 = vrot.slane %v417_v6, 7  ;;  %v427_v23 = vrot.slane %v418_v8, 7 }
 0x269   :  { %v1547_v24 = vpack.c.bf16 %v425_v20, %v423_v9  ;;  %v437_v26 = vsel %vm69_vm0, %v435_v17, %v436_v12  ;;  %v440_v27 = vsel %vm69_vm0, %v438_v25, %v439_v16  ;;  %v2012_v20 = vld [vmem:[%s2669_s3 + $0x8] sm:$0xff]  }
 0x26a   :  { %v1554_v28 = vpack.c.bf16 %v436_v12, %v437_v26  ;;  %v1557_v30 = vpack.c.bf16 %v439_v16, %v440_v27  ;;  %v428_v31 = vsel %vm56_vm2, %v426_v22, %v427_v23 }
 0x26b   :  { %1548 = vmatmul.mubr.msk.bf16.vlgmr.msra.gmra.mrb[4].mxu1 %vm2418_vm6, %v1547_v24  ;;  %v1551_v32 = vpack.c.bf16 %v428_v31, %v426_v22  ;;  %v2013_v22 = vld [vmem:[%s2669_s3 + $0x10] sm:$0xff]  }
 0x26c   :  { %1754 = vmatprep.mubr.msk.bf16.mxu0 %vm1553_vm7, %v1554_v28  ;;  %685 = vmatprep.mubr.bf16.mxu1 %v451_v29  ;;  %v887_v29 = vpack.c.bf16 %v2147_v1, %v2142_v0  ;;  %v2014_v0 = vld [vmem:[%s2669_s3 + $0x18] sm:$0xff]   ;;  %v888_v1 = vpack.c.bf16 %v2159_v5, %v2152_v2 }
 0x26d   :  { %1755 = vmatmul.mubr.msk.bf16.vlgmr.msra.gmra.mrb[8].mxu0 %vm1553_vm7, %v1557_v30  ;;  %1912 = vmatpush3.bf16.msra.mxu1 %v2187_v19 }
 0x26e   :  { %1913 = vmatprep.subr.bf16.mxu1 %v2059_v18  ;;  %1936 = vmatpush3.bf16.msra.mxu0 %v2187_v19  ;;  %v2011_v19 = vld [vmem:[%s2669_s3] sm:$0xff]  }
 0x26f   :  { %1937 = vmatprep.subr.bf16.mxu0 %v2059_v18  ;;  %1837 = vmatprep.mubr.msk.f32.mxu0 %vm2060_vm3, %v2061_v13 }
 0x271   :  { %1915 = vmatpush3.bf16.msra.mxu1 %v2238_v55 }
 0x272   :  { %1916 = vmatprep.subr.bf16.mxu1 %v2059_v18  ;;  %1939 = vmatpush3.bf16.msra.mxu0 %v2238_v55 }
 0x273   :  { %1552 = vmatmul.mubr.msk.bf16.gmra.mrb[8].mxu1 %vm2418_vm6, %v1551_v32  ;;  %1940 = vmatprep.subr.bf16.mxu0 %v2059_v18 }
 0x274   :  { %1790 = vmatprep.mubr.msk.f32.mxu1 %vm2060_vm3, %v2061_v13 }
 0x275   :  { %1918 = vmatpush3.bf16.msra.mxu1 %v2248_v58 }
 0x276   :  { %1919 = vmatprep.subr.bf16.mxu1 %v2059_v18  ;;  %1942 = vmatpush3.bf16.msra.mxu0 %v2248_v58 }
 0x277   :  { %1943 = vmatprep.subr.bf16.mxu0 %v2059_v18 }
 0x279   :  { %1921 = vmatpush3.bf16.msra.mxu1 %v2258_v61 }
 0x27a   :  { %1922 = vmatprep.subr.bf16.mxu1 %v2059_v18  ;;  %1945 = vmatpush3.bf16.msra.mxu0 %v2258_v61 }
 0x27b   :  { %1946 = vmatprep.subr.bf16.mxu0 %v2059_v18 }
 0x27d   :  { %1924 = vmatpush3.bf16.msra.mxu1 %v2268_v3 }
 0x27e   :  { %1925 = vmatprep.subr.bf16.mxu1 %v2059_v18  ;;  %1948 = vmatpush3.bf16.msra.mxu0 %v2268_v3 }
 0x27f   :  { %1949 = vmatprep.subr.bf16.mxu0 %v2059_v18 }
 0x281   :  { %1927 = vmatpush3.bf16.msra.mxu1 %v2278_v7 }
 0x282   :  { %1928 = vmatprep.subr.bf16.mxu1 %v2059_v18  ;;  %1951 = vmatpush3.bf16.msra.mxu0 %v2278_v7 }
 0x283   :  { %1952 = vmatprep.subr.bf16.mxu0 %v2059_v18 }
 0x285   :  { %1930 = vmatpush3.bf16.msra.mxu1 %v2288_v10 }
 0x286   :  { %1931 = vmatprep.subr.bf16.mxu1 %v2059_v18  ;;  %1954 = vmatpush3.bf16.msra.mxu0 %v2288_v10 }
 0x287   :  { %1955 = vmatprep.subr.bf16.mxu0 %v2059_v18 }
 0x289   :  { %1933 = vmatpush3.bf16.msra.mxu1 %v2299_v14 }
 0x28a   :  { %1957 = vmatpush3.bf16.msra.mxu0 %v2299_v14  ;;  %1793 = vmatprep.subr.bf16.mxu1 %v2011_v19 }
 0x28b   :  { %1860 = vmatprep.subr.bf16.mxu0 %v2061_v13 }
 0x33e   :  { %v1620_v55 = vpop.f32.mrb[4].mxu1 }
 0x33f   :  { %v1621_v58 = vpop.f32.mrb[5].mxu1 }
 0x340   :  { %v1622_v61 = vadd.f32 %v1621_v58, %v1620_v55  ;;  %v1756_v3 = vpop.f32.mrb[8].mxu0  ;;  %v1623_v7 = vpop.f32.mrb[6].mxu1 }
 0x341   :  { %v728_v33 = vpop.f32.mrb[9].mxu0  ;;  %v1624_v10 = vpop.f32.mrb[7].mxu1 }
 0x342   :  { %v2468_v34 = vadd.f32 %v1622_v61, %v728_v33  ;;  %v1625_v18 = vadd.f32 %v1624_v10, %v1623_v7  ;;  %v1757_v35 = vpop.f32.mrb[10].mxu0 }
 0x343   :  { %v731_v36 = vpop.f32.mrb[11].mxu0 }
 0x344   :  { %v2470_v14 = vadd.f32 %v1625_v18, %v731_v36  ;;  %v753_v44 = vmul.f32 %v2468_v34, %v2468_v34 }
 0x346   :  { %v1626_v37 = vpop.f32.mrb[8].mxu1  ;;  %v754_v40 = vmul.f32 %v2470_v14, %v2470_v14  ;;  %v743_v46 = vadd.f32 %v2470_v14, %v2468_v34 }
 0x347   :  { %v1627_v38 = vpop.f32.mrb[9].mxu1 }
 0x348   :  { %v1628_v41 = vadd.f32 %v1627_v38, %v1626_v37  ;;  %v1629_v42 = vpop.f32.mrb[10].mxu1  ;;  %v757_v49 = vadd.f32 %v754_v40, %v753_v44 }
 0x349   :  { %v1630_v43 = vpop.f32.mrb[11].mxu1 }
 0x34a   :  { %v2478_v47 = vadd.f32 %v1756_v3, %v1628_v41  ;;  %v1631_v48 = vadd.f32 %v1630_v43, %v1629_v42 }
 0x34c   :  { %v744_v50 = vadd.f32 %v743_v46, %v2478_v47  ;;  %v755_v51 = vmul.f32 %v2478_v47, %v2478_v47  ;;  %v2483_v52 = vadd.f32 %v1757_v35, %v1631_v48 }
 0x34e   :  { %v758_v53 = vadd.f32 %v757_v49, %v755_v51  ;;  %v745_v54 = vadd.f32 %v744_v50, %v2483_v52  ;;  %v756_v56 = vmul.f32 %v2483_v52, %v2483_v52  ;;  %v2015_v50 = vld [vmem:[%s2670_s4] sm:$0xff]   ;;  %v2016_v51 = vld [vmem:[%s2670_s4 + $0x8] sm:$0xff]  }
 0x350   :  { %v746_v57 = vrot.slane %v745_v54, 4  ;;  %v759_v59 = vadd.f32 %v758_v53, %v756_v56  ;;  %v2017_v53 = vld [vmem:[%s2670_s4 + $0x10] sm:$0xff]   ;;  %v2019_v56 = vld [vmem:[%s2670_s4 + $0x20] sm:$0xff]  }
 0x352   :  { %v747_v60 = vadd.f32 %v746_v57, %v745_v54  ;;  %v760_v62 = vrot.slane %v759_v59, 4  ;;  %v2018_v54 = vld [vmem:[%s2670_s4 + $0x18] sm:$0xff]   ;;  %v2020_v57 = vld [vmem:[%s2670_s4 + $0x28] sm:$0xff]  }
 0x354   :  { %v748_v63 = vrot.slane %v747_v60, 2  ;;  %v761_v4 = vadd.f32 %v760_v62, %v759_v59  ;;  %v2021_v59 = vld [vmem:[%s2671_s5] sm:$0xff]   ;;  %v2023_v62 = vld [vmem:[%s2671_s5 + $0x8] sm:$0xff]  }
 0x356   :  { %v749_v6 = vadd.f32 %v748_v63, %v747_v60  ;;  %v762_v8 = vrot.slane %v761_v4, 2  ;;  %v2022_v60 = vld [vmem:[%s2670_s4 + $0x30] sm:$0xff]   ;;  %v2024_v63 = vld [vmem:[%s2670_s4 + $0x38] sm:$0xff]  }
 0x358   :  { %v750_v9 = vrot.slane %v749_v6, 1  ;;  %v763_v15 = vadd.f32 %v762_v8, %v761_v4  ;;  %v2025_v4 = vld [vmem:[%s2671_s5 + $0x10] sm:$0xff]   ;;  %v2027_v8 = vld [vmem:[%s2671_s5 + $0x20] sm:$0xff]  }
 0x35a   :  { %v751_v11 = vadd.f32 %v750_v9, %v749_v6  ;;  %v764_v17 = vrot.slane %v763_v15, 1  ;;  %v2026_v6 = vld [vmem:[%s2671_s5 + $0x18] sm:$0xff]   ;;  %v2028_v9 = vld [vmem:[%s2671_s5 + $0x28] sm:$0xff]  }
 0x35c   :  { %v765_v12 = vadd.f32 %v764_v17, %v763_v15  ;;  %v752_v25 = vmul.f32 0.03125, %v751_v11  ;;  %v2029_v15 = vld [vmem:[%s2671_s5 + $0x30] sm:$0xff]   ;;  %v2030_v11 = vld [vmem:[%s2671_s5 + $0x38] sm:$0xff]  }
 0x35e   :  { %v766_v16 = vmul.f32 0.03125, %v765_v12 }
 0x360   :  { %v767_v21 = vsel %vm56_vm2, %v752_v25, %v766_v16 }
 0x361   :  { %1791 = vmatmul.mubr.f32.vlgmr.msra.gmra.mrb[2].mxu1 %v767_v21 }
 0x362   :  { %1794 = vmatpush3.bf16.msra.mxu1 %v2011_v19  ;;  %1801 = vmatprep.mubr.msk.bf16.mxu1 %vm94_vm1, %v887_v29 }
 0x363   :  { %1795 = vmatprep.subr.bf16.mxu1 %v2012_v20 }
 0x366   :  { %1796 = vmatpush3.bf16.msra.mxu1 %v2012_v20 }
 0x367   :  { %1797 = vmatprep.subr.bf16.mxu1 %v2013_v22 }
 0x36a   :  { %1798 = vmatpush3.bf16.msra.mxu1 %v2013_v22 }
 0x36b   :  { %1799 = vmatprep.subr.bf16.mxu1 %v2014_v0 }
 0x36e   :  { %1800 = vmatpush3.bf16.msra.mxu1 %v2014_v0 }
 0x36f   :  { %1840 = vmatprep.subr.bf16.mxu1 %v2015_v50 }
 0x371   :  { %1802 = vmatmul.mubr.msk.bf16.vlgmr.msra.gmra.mrb[12].mxu1 %vm94_vm1, %v888_v1  ;;  %v1076_v1 = vld [vmem:[%s2672_s12] sm:$0x1] }
 0x372   :  { %1841 = vmatpush3.bf16.msra.mxu1 %v2015_v50 }
 0x373   :  { %1842 = vmatprep.subr.bf16.mxu1 %v2016_v51 }
 0x376   :  { %1843 = vmatpush3.bf16.msra.mxu1 %v2016_v51 }
 0x377   :  { %1844 = vmatprep.subr.bf16.mxu1 %v2017_v53 }
 0x37a   :  { %1845 = vmatpush3.bf16.msra.mxu1 %v2017_v53 }
 0x37b   :  { %1846 = vmatprep.subr.bf16.mxu1 %v2018_v54 }
 0x37e   :  { %1847 = vmatpush3.bf16.msra.mxu1 %v2018_v54 }
 0x37f   :  { %1848 = vmatprep.subr.bf16.mxu1 %v2019_v56 }
 0x382   :  { %1849 = vmatpush3.bf16.msra.mxu1 %v2019_v56 }
 0x383   :  { %1850 = vmatprep.subr.bf16.mxu1 %v2020_v57 }
 0x386   :  { %1851 = vmatpush3.bf16.msra.mxu1 %v2020_v57 }
 0x387   :  { %1852 = vmatprep.subr.bf16.mxu1 %v2022_v60 }
 0x38a   :  { %1853 = vmatpush3.bf16.msra.mxu1 %v2022_v60 }
 0x38b   :  { %1854 = vmatprep.subr.bf16.mxu1 %v2024_v63 }
 0x38e   :  { %1855 = vmatpush3.bf16.msra.mxu1 %v2024_v63 }
 0x38f   :  { %1880 = vmatprep.subr.bf16.mxu1 %v2061_v13 }
 0x434   :  { %v2504_v23 = vpop.f32.mrb[2].mxu1 }
 0x435   :  { %v1792_v24 = vpop.f32.mrb[3].mxu1 }
 0x444   :  { %v2506_v26 = vpop.f32.mrb[12].mxu1 }
 0x445   :  { %v2508_v27 = vpop.f32.mrb[13].mxu1  ;;  %v988_v32 = vmul.f32 %v2506_v26, %v2506_v26 }
 0x446   :  { %v2510_v28 = vpop.f32.mrb[14].mxu1  ;;  %v986_v31 = vmul.f32 %v2508_v27, %v2508_v27 }
 0x447   :  { %v2512_v30 = vpop.f32.mrb[15].mxu1  ;;  %v989_v58 = vmul.f32 %v2510_v28, %v2510_v28 }
 0x448   :  { %v976_v2 = vadd.f32 %v2512_v30, %v2508_v27  ;;  %v987_v5 = vmul.f32 %v2512_v30, %v2512_v30 }
 0x44a   :  { %v977_v19 = vadd.f32 %v2506_v26, %v976_v2  ;;  %v990_v55 = vadd.f32 %v987_v5, %v986_v31  ;;  %v1097_v2 = vld [vmem:[%s2673_s13] sm:$0x1] }
 0x44c   :  { %v978_v61 = vadd.f32 %v2510_v28, %v977_v19  ;;  %v991_v3 = vadd.f32 %v990_v55, %v988_v32 }
 0x44e   :  { %v979_v7 = vrot.slane %v978_v61, 4  ;;  %v992_v33 = vadd.f32 %v991_v3, %v989_v58 }
 0x450   :  { %v980_v10 = vadd.f32 %v979_v7, %v978_v61  ;;  %v993_v18 = vrot.slane %v992_v33, 4 }
 0x452   :  { %v981_v35 = vrot.slane %v980_v10, 2  ;;  %v994_v36 = vadd.f32 %v993_v18, %v992_v33 }
 0x454   :  { %v982_v37 = vadd.f32 %v981_v35, %v980_v10  ;;  %v995_v38 = vrot.slane %v994_v36, 2 }
 0x456   :  { %v983_v40 = vrot.slane %v982_v37, 1  ;;  %v996_v41 = vadd.f32 %v995_v38, %v994_v36 }
 0x458   :  { %v984_v42 = vadd.f32 %v983_v40, %v982_v37  ;;  %v997_v43 = vrot.slane %v996_v41, 1 }
 0x45a   :  { %v998_v44 = vadd.f32 %v997_v43, %v996_v41  ;;  %v985_v46 = vmul.f32 0.03125, %v984_v42 }
 0x45c   :  { %v999_v48 = vmul.f32 0.03125, %v998_v44 }
 0x45e   :  { %v1000_v49 = vsel %vm56_vm2, %v985_v46, %v999_v48 }
 0x45f   :  { %1838 = vmatmul.mubr.f32.vlgmr.msra.gmra.mrb[12].mxu0 %v1000_v49 }
 0x460   :  { %1876 = vmatprep.mubr.msk.bf16.mxu0 %vm2060_vm3, %v2061_v13  ;;  %1861 = vmatpush3.bf16.msra.mxu0 %v2021_v59 }
 0x461   :  { %1862 = vmatprep.subr.bf16.mxu0 %v2061_v13 }
 0x464   :  { %1863 = vmatpush3.bf16.msra.mxu0 %v2023_v62 }
 0x465   :  { %1864 = vmatprep.subr.bf16.mxu0 %v2061_v13 }
 0x468   :  { %1865 = vmatpush3.bf16.msra.mxu0 %v2025_v4 }
 0x469   :  { %1866 = vmatprep.subr.bf16.mxu0 %v2061_v13 }
 0x46c   :  { %1867 = vmatpush3.bf16.msra.mxu0 %v2026_v6 }
 0x46d   :  { %1868 = vmatprep.subr.bf16.mxu0 %v2061_v13 }
 0x470   :  { %1869 = vmatpush3.bf16.msra.mxu0 %v2027_v8 }
 0x471   :  { %1870 = vmatprep.subr.bf16.mxu0 %v2061_v13 }
 0x474   :  { %1871 = vmatpush3.bf16.msra.mxu0 %v2028_v9 }
 0x475   :  { %1872 = vmatprep.subr.bf16.mxu0 %v2061_v13 }
 0x478   :  { %1873 = vmatpush3.bf16.msra.mxu0 %v2029_v15 }
 0x479   :  { %1874 = vmatprep.subr.bf16.mxu0 %v2061_v13 }
 0x47c   :  { %1875 = vmatpush3.bf16.msra.mxu0 %v2030_v11 }
 0x532   :  { %v1067_v17 = vpop.f32.mrb[12].mxu0 }
 0x533   :  { %v1071_v12 = vmul.f32 %v1067_v17, %v1067_v17  ;;  %v1839_v25 = vpop.f32.mrb[13].mxu0 }
 0x535   :  { %v1073_v16 = vrot.slane %v1071_v12, 7 }
 0x537   :  { %v1075_v29 = vsub.f32 %v1067_v17, %v1073_v16  ;;  %v838_v16 = vmul.f32 %v2504_v23, %v2504_v23 }
 0x539   :  { %v1077_v20 = vadd.f32 1e-05, %v1075_v29  ;;  %v840_v29 = vrot.slane %v838_v16, 7 }
 0x53b   :  { %2033 = vrsqrt.f32 %v1077_v20  ;;  %v842_v20 = vsub.f32 %v2504_v23, %v840_v29 }
 0x545   :  { %v2034_v21 = vpop.eup %2033 }
 0x546   :  { %v1086_v22 = vrot.slane %v2034_v21, %v2398_v39  ;;  %v844_v21 = vadd.f32 1e-05, %v842_v20 }
 0x548   :  { %v1087_v0 = vcombine.high %v1086_v22, %v1086_v22  ;;  %2035 = vrsqrt.f32 %v844_v21 }
 0x54a   :  { %v1094_v24 = vrot.slane %v1087_v0, %v2398_v39 }
 0x54c   :  { %v1096_v31 = vmul.f32 %v1094_v24, %v1076_v1 }
 0x54e   :  { %v1098_v5 = vmul.f32 %v1096_v31, %v1067_v17  ;;  %v1104_v32 = vrot.slane %v1096_v31, %v2405_v45 }
 0x550   :  { %v1099_v19 = vsub.f32 %v1097_v2, %v1098_v5  ;;  %v1108_v55 = vmul.f32 %v2506_v26, %v1104_v32  ;;  %v1109_v58 = vmul.f32 %v2510_v28, %v1104_v32  ;;  %v1106_v61 = vmul.f32 %v1104_v32, %v2508_v27 }
 0x551   :  { %v1107_v3 = vmul.f32 %v1104_v32, %v2512_v30 }
 0x552   :  { %v1114_v7 = vrot.slane %v1099_v19, %v2405_v45  ;;  %v2036_v24 = vpop.eup %2035 }
 0x554   :  { %v2599_v33 = vadd.f32 %v1114_v7, %v1106_v61  ;;  %v2601_v10 = vadd.f32 %v1114_v7, %v1107_v3  ;;  %v2603_v18 = vadd.f32 %v1114_v7, %v1108_v55  ;;  %v2605_v35 = vadd.f32 %v1114_v7, %v1109_v58 }
 0x555   :  { %v853_v58 = vrot.slane %v2036_v24, %v2398_v39 }
 0x556   :  { %v1120_v36 = vpack.c.bf16 %v2601_v10, %v2599_v33  ;;  %v1121_v26 = vpack.c.bf16 %v2605_v35, %v2603_v18  ;;  %v1263_v27 = vadd.f32 %v2601_v10, %v2599_v33  ;;  %v1270_v28 = vadd.f32 %v2605_v35, %v2603_v18 }
 0x557   :  { %v854_v61 = vcombine.high %v853_v58, %v853_v58 }
 0x558   :  { %1856 = vmatprep.mubr.bf16.mxu1 %v1120_v36  ;;  %v1264_v30 = vrot.slane %v1263_v27, 4  ;;  %v1271_v37 = vrot.slane %v1270_v28, 4 }
 0x559   :  { %1857 = vmatmul.mubr.bf16.vlgmr.msra.gmra.mrb[16].mxu1 %v1121_v26  ;;  %v861_v7 = vrot.slane %v854_v61, %v2398_v39  ;;  %v843_v26 = vld [vmem:[%s2675_s10] sm:$0x1] }
 0x55a   :  { %v1265_v38 = vadd.f32 %v1264_v30, %v1263_v27  ;;  %v1272_v40 = vadd.f32 %v1271_v37, %v1270_v28  ;;  %1882 = vmatprep.mubr.msk.bf16.mxu1 %vm2060_vm3, %v2061_v13  ;;  %v1395_v13 = vld [vmem:[%s2674_s6] sm:$0x3] }
 0x55b   :  { %v1402_v63 = vsel %vm1400_vm9, %v1395_v13, 0 }
 0x55c   :  { %v1266_v41 = vrot.slane %v1265_v38, 2  ;;  %v1273_v42 = vrot.slane %v1272_v40, 2  ;;  %1881 = vmatpush3.bf16.msra.mxu1 %v1402_v63 }
 0x55e   :  { %v1267_v43 = vadd.f32 %v1266_v41, %v1265_v38  ;;  %v1274_v44 = vadd.f32 %v1273_v42, %v1272_v40  ;;  %v863_v38 = vmul.f32 %v861_v7, %v843_v26 }
 0x560   :  { %v1268_v46 = vrot.slane %v1267_v43, 1  ;;  %v1275_v48 = vrot.slane %v1274_v44, 1 }
 0x562   :  { %v1269_v49 = vadd.f32 %v1268_v46, %v1267_v43  ;;  %v1276_v50 = vadd.f32 %v1275_v48, %v1274_v44  ;;  %v865_v44 = vmul.f32 %v863_v38, %v2504_v23  ;;  %v864_v46 = vld [vmem:[%s2676_s11] sm:$0x1] }
 0x564   :  { %v1278_v51 = vmul.f32 0.0625, %v1269_v49  ;;  %v1279_v53 = vmul.f32 0.0625, %v1276_v50  ;;  %v866_v48 = vsub.f32 %v864_v46, %v865_v44  ;;  %v871_v50 = vrot.slane %v863_v38, %v2405_v45 }
 0x566   :  { %v1280_v54 = vpack.c.bf16 %v1278_v51, %v1278_v51  ;;  %v1281_v56 = vpack.c.bf16 %v1279_v53, %v1279_v53  ;;  %v881_v53 = vrot.slane %v866_v48, %v2405_v45 }
 0x568   :  { %v1300_v57 = vunpack.c.l.b16 %v1280_v54  ;;  %v1301_v59 = vunpack.c.l.b16 %v1281_v56 }
 0x56a   :  { %v1303_v60 = vsel %vm1302_vm8, %v1301_v59, %v1300_v57  ;;  %v873_v57 = vmul.f32 %v871_v50, %v2468_v34 }
 0x56b   :  { %v1304_v62 = vpack.c.b16 %v1303_v60, %v1303_v60  ;;  %v874_v60 = vmul.f32 %v871_v50, %v2470_v14 }
 0x56d   :  { %1877 = vmatmul.mubr.bf16.vlgmr.msra.gmra.mrb[16].mxu0 %v1304_v62 }
 0x62c   :  { %v1858_v4 = vpop.f32.mrb[16].mxu1 }
 0x62d   :  { %v1220_v6 = vpop.f32.mrb[17].mxu1  ;;  %v1575_v31 = vmul.f32 -1.442695, %v1858_v4  ;;  %v875_v4 = vmul.f32 %v871_v50, %v2478_v47 }
 0x62e   :  { %v1859_v8 = vpop.f32.mrb[18].mxu1  ;;  %v1573_v22 = vmul.f32 -1.442695, %v1220_v6  ;;  %v876_v6 = vmul.f32 %v871_v50, %v2483_v52 }
 0x62f   :  { %v1223_v9 = vpop.f32.mrb[19].mxu1  ;;  %v1576_v32 = vmul.f32 -1.442695, %v1859_v8  ;;  %v883_v8 = vadd.f32 %v881_v53, %v873_v57 }
 0x630   :  { %v1574_v0 = vmul.f32 -1.442695, %v1223_v9  ;;  %2037 = vpow2.f32 %v1573_v22  ;;  %v886_v14 = vadd.f32 %v881_v53, %v876_v6 }
 0x63a   :  { %v2038_v3 = vpop.eup %2037 }
 0x63b   :  { %v1247_v40 = vadd.f32 1.0, %v2038_v3 }
 0x640   :  { %v1388_v15 = vpop.f32.mrb[16].mxu0 }
 0x641   :  { %v1394_v11 = vpack.c.bf16 %v1388_v15, %v1388_v15  ;;  %v1878_v17 = vpop.f32.mrb[17].mxu0  ;;  %v884_v15 = vadd.f32 %v881_v53, %v874_v60 }
 0x642   :  { %v1391_v12 = vpop.f32.mrb[18].mxu0 }
 0x643   :  { %v1879_v25 = vpop.f32.mrb[19].mxu0  ;;  %1883 = vmatmul.mubr.msk.bf16.vlgmr.msra.gmra.mrb[20].mxu1 %vm1396_vm10, %v1394_v11  ;;  %v885_v12 = vadd.f32 %v881_v53, %v875_v4 }
 0x716   :  { %v1438_v1 = vpop.f32.mrb[20].mxu1 }
 0x717   :  { %v1586_v2 = vmul.f32 -1.442695, %v1438_v1  ;;  %v1884_v5 = vpop.f32.mrb[21].mxu1 }
 0x718   :  { %v1441_v19 = vpop.f32.mrb[22].mxu1 }
 0x719   :  { %2039 = vpow2.f32 %v1586_v2  ;;  %v1885_v55 = vpop.f32.mrb[23].mxu1 }
 0x71a   :  { %2041 = vpow2.f32 %v1574_v0 }
 0x71b   :  { %2043 = vpow2.f32 %v1575_v31 }
 0x71c   :  { %2045 = vpow2.f32 %v1576_v32 }
 0x723   :  { %v2040_v36 = vpop.eup %2039 }
 0x724   :  { %v2042_v27 = vpop.eup %2041  ;;  %v1447_v28 = vadd.f32 1.0, %v2040_v36 }
 0x725   :  { %v2044_v30 = vpop.eup %2043  ;;  %v1248_v41 = vadd.f32 1.0, %v2042_v27 }
 0x726   :  { %v2046_v37 = vpop.eup %2045  ;;  %2047 = vrcp.f32 %v1447_v28  ;;  %v1249_v42 = vadd.f32 1.0, %v2044_v30 }
 0x727   :  { %v1250_v43 = vadd.f32 1.0, %v2046_v37  ;;  %2049 = vrcp.f32 %v1247_v40 }
 0x728   :  { %2051 = vrcp.f32 %v1248_v41 }
 0x729   :  { %2053 = vrcp.f32 %v1249_v42 }
 0x72a   :  { %2055 = vrcp.f32 %v1250_v43 }
 0x730   :  { %v2048_v49 = vpop.eup %2047 }
 0x731   :  { %v1457_v51 = vrot.slane %v2048_v49, %v2398_v39  ;;  %v2050_v23 = vpop.eup %2049 }
 0x732   :  { %v2052_v59 = vpop.eup %2051 }
 0x733   :  { %v1458_v54 = vcombine.high %v1457_v51, %v1457_v51  ;;  %v1465_v56 = vrot.slane %v1457_v51, %v2398_v39  ;;  %v2054_v63 = vpop.eup %2053  ;;  %v1260_v25 = vmul.f32 %v2052_v59, %v2601_v10 }
 0x734   :  { %v2056_v9 = vpop.eup %2055  ;;  %v1261_v20 = vmul.f32 %v2054_v63, %v2603_v18 }
 0x735   :  { %v1472_v62 = vrot.slane %v1458_v54, %v2398_v39  ;;  %v1476_v13 = vrot.slane %v1465_v56, %v2405_v45  ;;  %v1259_v39 = vmul.f32 %v2050_v23, %v2599_v33 }
 0x737   :  { %v1480_v11 = vrot.slane %v1472_v62, %v2405_v45  ;;  %v1483_v17 = vmul.f32 %v1476_v13, %v2599_v33  ;;  %v1484_v34 = vmul.f32 %v1476_v13, %v2601_v10  ;;  %v1262_v45 = vmul.f32 %v2056_v9, %v2605_v35 }
 0x739   :  { %v1485_v16 = vmul.f32 %v1480_v11, %v2603_v18  ;;  %v1486_v47 = vmul.f32 %v1480_v11, %v2605_v35  ;;  %v1487_v52 = vadd.f32 %v1483_v17, %v883_v8  ;;  %v1488_v29 = vadd.f32 %v1484_v34, %v884_v15 }
 0x73b   :  { %v1489_v21 = vadd.f32 %v1485_v16, %v885_v12  ;;  %v1490_v22 = vadd.f32 %v1486_v47, %v886_v14  ;;  %v1491_v0 = vadd.f32 %v1487_v52, %v1259_v39  ;;  %v1492_v1 = vadd.f32 %v1488_v29, %v1260_v25 }
 0x73d   :  { %v1493_v24 = vadd.f32 %v1489_v21, %v1261_v20  ;;  %v1494_v31 = vadd.f32 %v1490_v22, %v1262_v45  ;;  %v1495_v2 = vmax.f32 %v1491_v0, 0.0  ;;  %v1496_v33 = vmax.f32 %v1492_v1, 0.0 }
 0x73f   :  { %v1497_v5 = vmax.f32 %v1493_v24, 0.0  ;;  %v1498_v10 = vmax.f32 %v1494_v31, 0.0  ;;  %1499 = vst [vmem:[%s2677_s14] sm:$0xff] %v1495_v2  ;;  %1500 = vst [vmem:[%s2677_s14 + $0x8] sm:$0xff] %v1496_v33 }
 0x741   :  { %1501 = vst [vmem:[%s2677_s14 + $0x10] sm:$0xff] %v1497_v5  ;;  %1502 = vst [vmem:[%s2677_s14 + $0x18] sm:$0xff] %v1498_v10 }

</bundles_post_ra>
